<compile_context>
chip_gen: v7x
topology: tpu7x:2x2x1
jax: 0.10.0
libtpu: 0.0.40
codegen_flags: <defaults>
</compile_context>

<pallas_src>
import math
import functools

import jax
import jax.numpy as jnp
from jax import lax
from jax.experimental import pallas as pl
from jax.experimental.pallas import tpu as pltpu


# ----------------------------------------------------------------------------
# Tiling helper: largest row tile <= target that divides n and is a multiple
# of 8 (sublane aligned); falls back to full extent for awkward n.
# ----------------------------------------------------------------------------
def _pick_row_tile(n, target):
    if n <= target:
        return n
    for t in range(target, 7, -1):
        if n % t == 0 and t % 8 == 0:
            return t
    # TODO(synk): masked row tiling for prime-ish N instead of full-extent.
    return n


# ----------------------------------------------------------------------------
# Kernel 1: wide lane-dense linear   y[b, rows] = x[b, rows] @ W + bias
#   Used for Q/K/V projections (Dout = H*dh) and the output projection
#   (Din = H*dv, Dout = d_model).  Weight block index is constant along the
#   row axis -> weight stays resident in VMEM across row tiles.
# ----------------------------------------------------------------------------
def _linear_kernel(x_ref, w_ref, b_ref, o_ref):
    x = x_ref[0]                                   # (TM, Din)  model dtype
    w = w_ref[...]                                 # (Din, Dout)
    y = jnp.dot(x, w, preferred_element_type=jnp.float32)   # f32 accumulation
    y = y + b_ref[...].astype(jnp.float32)                   # (1, Dout) bcast
    o_ref[0] = y.astype(o_ref.dtype)


def wide_linear(x, w, b, *, row_tile=512):
    """x: (B, N, Din), w: (Din, Dout), b: (Dout,) -> (B, N, Dout)."""
    B, N, Din = x.shape
    Dout = w.shape[1]
    TM = _pick_row_tile(N, row_tile)
    b2 = b.reshape(1, Dout)
    itemsize = x.dtype.itemsize
    cost = pl.CostEstimate(
        flops=2 * B * N * Din * Dout,
        transcendentals=0,
        bytes_accessed=(x.size + w.size + b2.size + B * N * Dout) * itemsize,
    )
    return pl.pallas_call(
        _linear_kernel,
        out_shape=jax.ShapeDtypeStruct((B, N, Dout), x.dtype),
        grid=(B, N // TM),
        in_specs=[
            pl.BlockSpec((1, TM, Din), lambda bb, i: (bb, i, 0)),
            pl.BlockSpec((Din, Dout), lambda bb, i: (0, 0)),
            pl.BlockSpec((1, Dout), lambda bb, i: (0, 0)),
        ],
        out_specs=pl.BlockSpec((1, TM, Dout), lambda bb, i: (bb, i, 0)),
        compiler_params=pltpu.CompilerParams(
            dimension_semantics=("parallel", "parallel")),
        cost_estimate=cost,
    )(x, w, b2)


# ----------------------------------------------------------------------------
# Kernel 2: per-(batch, head, L-tile) scaled dot-product attention.
#   Scale folded into Q; scores on MXU with f32 accumulation.
#   Two variants: with attention-weights output (exact softmax, f32 A) and
#   without (deferred normalization + EUP approx reciprocal, no L*S store).
# ----------------------------------------------------------------------------
# TODO(synk): verify via pl.lower_as_mlir that contracting K's last dim lowers
# without an XLU transpose of the (S, E) tile; otherwise store K pre-transposed
# as (B, H, E, S) in the projection epilogue.
# TODO(synk): for very long S, add an "arbitrary" S grid axis with online
# softmax (flash over S) so VMEM stays O(tq * S_chunk).
def _attn_kernel_with_a(q_ref, k_ref, v_ref, o_ref, a_ref, *, scale):
    q = q_ref[0, 0] * scale                        # (tq, E) — L*E mults, not L*S
    k = k_ref[0, 0]                                # (S, E)
    v = v_ref[0, 0]                                # (S, D)
    s = lax.dot_general(q, k, dimension_numbers=(((1,), (1,)), ((), ())),
                        preferred_element_type=jnp.float32)       # (tq, S)
    m = jnp.max(s, axis=-1, keepdims=True)
    p = jnp.exp(s - m)
    l = jnp.sum(p, axis=-1, keepdims=True)
    a = p * pl.reciprocal(l, approx=False)         # exact: A is returned
    a_ref[0, 0] = a.astype(a_ref.dtype)
    o = jnp.dot(a.astype(v.dtype), v, preferred_element_type=jnp.float32)
    o_ref[0, 0] = o.astype(o_ref.dtype)


def _attn_kernel_no_a(q_ref, k_ref, v_ref, o_ref, *, scale):
    q = q_ref[0, 0] * scale
    k = k_ref[0, 0]
    v = v_ref[0, 0]
    s = lax.dot_general(q, k, dimension_numbers=(((1,), (1,)), ((), ())),
                        preferred_element_type=jnp.float32)
    m = jnp.max(s, axis=-1, keepdims=True)
    p = jnp.exp(s - m)
    l = jnp.sum(p, axis=-1, keepdims=True)
    o = jnp.dot(p.astype(v.dtype), v, preferred_element_type=jnp.float32)
    # Deferred normalization on the narrow (tq, D) output; EUP approx recip.
    o = o * pl.reciprocal(l, approx=True)
    o_ref[0, 0] = o.astype(o_ref.dtype)


def multi_head_attention(q, k, v, *, output_attention=True, q_tile=256):
    """q: (B,H,L,E), k: (B,H,S,E), v: (B,H,S,D)
       -> (B,H,L,D) [, (B,H,L,S) f32 attention weights]."""
    B, H, L, E = q.shape
    S, D = v.shape[2], v.shape[3]
    tq = _pick_row_tile(L, q_tile)
    scale = 1.0 / math.sqrt(E)
    itemsize = q.dtype.itemsize

    in_specs = [
        pl.BlockSpec((1, 1, tq, E), lambda b, h, i: (b, h, i, 0)),
        pl.BlockSpec((1, 1, S, E), lambda b, h, i: (b, h, 0, 0)),
        pl.BlockSpec((1, 1, S, D), lambda b, h, i: (b, h, 0, 0)),
    ]
    o_spec = pl.BlockSpec((1, 1, tq, D), lambda b, h, i: (b, h, i, 0))
    o_shape = jax.ShapeDtypeStruct((B, H, L, D), q.dtype)

    bytes_core = (q.size + k.size + v.size + B * H * L * D) * itemsize
    if output_attention:
        kernel = functools.partial(_attn_kernel_with_a, scale=scale)
        out_shape = (o_shape, jax.ShapeDtypeStruct((B, H, L, S), jnp.float32))
        out_specs = (o_spec,
                     pl.BlockSpec((1, 1, tq, S), lambda b, h, i: (b, h, i, 0)))
        bytes_accessed = bytes_core + B * H * L * S * 4
    else:
        kernel = functools.partial(_attn_kernel_no_a, scale=scale)
        out_shape = o_shape
        out_specs = o_spec
        bytes_accessed = bytes_core

    cost = pl.CostEstimate(
        flops=2 * B * H * L * S * (E + D),
        transcendentals=B * H * L * S,
        bytes_accessed=bytes_accessed,
    )
    result = pl.pallas_call(
        kernel,
        out_shape=out_shape,
        grid=(B, H, L // tq),
        in_specs=in_specs,
        out_specs=out_specs,
        compiler_params=pltpu.CompilerParams(
            dimension_semantics=("parallel", "parallel", "parallel")),
        cost_estimate=cost,
    )(q, k, v)

    if output_attention:
        return result[0], result[1]
    return result, None


# ----------------------------------------------------------------------------
# Cheap XLA layout passes (review-sanctioned) on lane-dense slabs.
# ----------------------------------------------------------------------------
def _split_heads(x, H):
    B, N, HD = x.shape
    return x.reshape(B, N, H, HD // H).transpose(0, 2, 1, 3)     # (B,H,N,dh)


def _merge_heads(x):
    B, H, N, D = x.shape
    return x.transpose(0, 2, 1, 3).reshape(B, N, H * D)          # (B,N,H*D)


# ----------------------------------------------------------------------------
# AttentionLayer forward.
# ----------------------------------------------------------------------------
def attention_layer_forward(params, queries, keys, values, attn_mask=None,
                            tau=None, delta=None, n_heads=4,
                            output_attention=True):
    # attn_mask is None in this configuration (FullAttention, no masking);
    # dropout is identity (eval).
    # TODO(synk): add masked-score support (TriangularCausalMask) if needed.
    H = n_heads

    # Wide, all-heads-fused projections (lane-dense outputs).
    q_flat = wide_linear(queries, params["wq"], params["bq"])    # (B,L,H*dk)
    k_flat = wide_linear(keys, params["wk"], params["bk"])       # (B,S,H*dk)
    v_flat = wide_linear(values, params["wv"], params["bv"])     # (B,S,H*dv)

    q = _split_heads(q_flat, H)                                  # (B,H,L,dk)
    k = _split_heads(k_flat, H)                                  # (B,H,S,dk)
    v = _split_heads(v_flat, H)                                  # (B,H,S,dv)

    out_h, attn = multi_head_attention(q, k, v,
                                       output_attention=output_attention)

    out_merged = _merge_heads(out_h)                             # (B,L,H*dv)
    out = wide_linear(out_merged, params["wo"], params["bo"])    # (B,L,d_model)
    return out, attn


# ----------------------------------------------------------------------------
# Params (already in the (in, out) layouts the kernels consume — no per-call
# weight transposes) + pure-JAX reference.
# ----------------------------------------------------------------------------
def init_params(key, d_model, n_heads, d_keys=None, d_values=None,
                dtype=jnp.float32):
    d_keys = d_keys or d_model // n_heads
    d_values = d_values or d_model // n_heads
    ks = jax.random.split(key, 8)

    def lin(kw, kb, d_in, d_out):
        bound = 1.0 / math.sqrt(d_in)
        w = jax.random.uniform(kw, (d_in, d_out), dtype, -bound, bound)
        b = jax.random.uniform(kb, (d_out,), dtype, -bound, bound)
        return w, b

    wq, bq = lin(ks[0], ks[1], d_model, d_keys * n_heads)
    wk, bk = lin(ks[2], ks[3], d_model, d_keys * n_heads)
    wv, bv = lin(ks[4], ks[5], d_model, d_values * n_heads)
    wo, bo = lin(ks[6], ks[7], d_values * n_heads, d_model)
    return dict(wq=wq, bq=bq, wk=wk, bk=bk, wv=wv, bv=bv, wo=wo, bo=bo)


def _reference(params, queries, keys, values, n_heads):
    B, L, _ = queries.shape
    _, S, _ = keys.shape
    H = n_heads
    q = queries @ params["wq"] + params["bq"]
    k = keys @ params["wk"] + params["bk"]
    v = values @ params["wv"] + params["bv"]
    dk = q.shape[-1] // H
    dv = v.shape[-1] // H
    q = q.reshape(B, L, H, dk)
    k = k.reshape(B, S, H, dk)
    v = v.reshape(B, S, H, dv)
    s = jnp.einsum("blhe,bshe->bhls", q, k) / math.sqrt(dk)
    a = jax.nn.softmax(s, axis=-1)
    o = jnp.einsum("bhls,bshd->blhd", a, v).reshape(B, L, H * dv)
    return o @ params["wo"] + params["bo"], a


if __name__ == "__main__":
    B, L, S, d_model, n_heads = 2, 8, 8, 32, 4

    key = jax.random.PRNGKey(0)
    kp, kq, kk, kv = jax.random.split(key, 4)
    params = init_params(kp, d_model, n_heads)

    queries = jax.random.normal(kq, (B, L, d_model), jnp.float32)
    keys = jax.random.normal(kk, (B, S, d_model), jnp.float32)
    values = jax.random.normal(kv, (B, S, d_model), jnp.float32)

    ref_out, ref_attn = _reference(params, queries, keys, values, n_heads)

    # Path 1: with attention-weights output (exact softmax normalization).
    fwd = jax.jit(functools.partial(attention_layer_forward,
                                    n_heads=n_heads, output_attention=True))
    out, attn = fwd(params, queries, keys, values)
    jax.block_until_ready((out, attn))
    assert out.shape == (B, L, d_model)
    assert attn.shape == (B, n_heads, L, S)
    assert jnp.allclose(out, ref_out, atol=1e-4, rtol=1e-4)
    assert jnp.allclose(attn, ref_attn, atol=1e-5, rtol=1e-5)

    # Path 2: no attention-weights output (deferred normalization, EUP recip).
    fwd_no_a = jax.jit(functools.partial(attention_layer_forward,
                                         n_heads=n_heads,
                                         output_attention=False))
    out2, attn2 = fwd_no_a(params, queries, keys, values)
    jax.block_until_ready(out2)
    assert attn2 is None
    assert jnp.allclose(out2, ref_out, atol=1e-2, rtol=1e-2)

    print("KERNEL_OK")
</pallas_src>

<mosaic_0001>
module attributes {stable_mosaic.version = 11 : i64} {
  func.func @_linear_kernel(%arg0: i32, %arg1: i32, %arg2: memref<1x8x32xf32, #tpu.memory_space<vmem>>, %arg3: memref<32x32xf32, #tpu.memory_space<vmem>>, %arg4: memref<1x32xf32, #tpu.memory_space<vmem>>, %arg5: memref<1x8x32xf32, #tpu.memory_space<vmem>>) attributes {dimension_semantics = [#tpu.dimension_semantics<parallel>, #tpu.dimension_semantics<parallel>], iteration_bounds = array<i64: 2, 1>, scalar_prefetch = 0 : i64, scratch_operands = 0 : i64, tpu.core_type = #tpu.core_type<tc>, window_params = [{transform_indices = @transform_0, window_bounds = array<i64: 1, 8, 32>}, {pipeline_mode = #tpu.pipeline_mode<synchronous>, transform_indices = @transform_1, window_bounds = array<i64: 32, 32>}, {pipeline_mode = #tpu.pipeline_mode<synchronous>, transform_indices = @transform_2, window_bounds = array<i64: 1, 32>}, {transform_indices = @transform_3, window_bounds = array<i64: 1, 8, 32>}]} {
    %c0 = arith.constant 0 : index
    %c0_0 = arith.constant 0 : index
    %c0_1 = arith.constant 0 : index
    %0 = vector.load %arg2[%c0, %c0_0, %c0_1] : memref<1x8x32xf32, #tpu.memory_space<vmem>>, vector<1x8x32xf32>
    %1 = vector.shape_cast %0 : vector<1x8x32xf32> to vector<8x32xf32>
    %c0_2 = arith.constant 0 : index
    %c0_3 = arith.constant 0 : index
    %2 = vector.load %arg3[%c0_2, %c0_3] : memref<32x32xf32, #tpu.memory_space<vmem>>, vector<32x32xf32>
    %cst = arith.constant dense<0.000000e+00> : vector<8x32xf32>
    %3 = tpu.matmul %1, %2, %cst {dimension_numbers = #tpu.dot_dimension_numbers<[1], [0], [0], [1], [0, 0, 1, 1], [], []>} : vector<8x32xf32>, vector<32x32xf32>, vector<8x32xf32> -> vector<8x32xf32>
    %c0_4 = arith.constant 0 : index
    %c0_5 = arith.constant 0 : index
    %4 = vector.load %arg4[%c0_4, %c0_5] : memref<1x32xf32, #tpu.memory_space<vmem>>, vector<1x32xf32>
    %5 = vector.broadcast %4 : vector<1x32xf32> to vector<8x32xf32>
    %6 = arith.addf %3, %5 : vector<8x32xf32>
    %c0_6 = arith.constant 0 : index
    %c0_7 = arith.constant 0 : index
    %c0_8 = arith.constant 0 : index
    %7 = vector.load %arg5[%c0_6, %c0_7, %c0_8] : memref<1x8x32xf32, #tpu.memory_space<vmem>>, vector<1x8x32xf32>
    %8 = vector.shape_cast %7 : vector<1x8x32xf32> to vector<8x32xf32>
    %9 = vector.shape_cast %6 : vector<8x32xf32> to vector<1x8x32xf32>
    tpu.vector_store %arg5[%c0_6, %c0_7, %c0_8], %9 {strides = array<i32>} : memref<1x8x32xf32, #tpu.memory_space<vmem>>, vector<1x8x32xf32>,
    return
  }
  func.func @transform_0(%arg0: i32, %arg1: i32) -> (i32, i32, i32) {
    %c0_i32 = arith.constant 0 : i32
    %c0_i32_0 = arith.constant 0 : i32
    return %arg0, %arg1, %c0_i32 : i32, i32, i32
  }
  func.func @transform_1(%arg0: i32, %arg1: i32) -> (i32, i32) {
    %c0_i32 = arith.constant 0 : i32
    %c0_i32_0 = arith.constant 0 : i32
    %c0_i32_1 = arith.constant 0 : i32
    return %c0_i32, %c0_i32_0 : i32, i32
  }
  func.func @transform_2(%arg0: i32, %arg1: i32) -> (i32, i32) {
    %c0_i32 = arith.constant 0 : i32
    %c0_i32_0 = arith.constant 0 : i32
    %c0_i32_1 = arith.constant 0 : i32
    return %c0_i32, %c0_i32_0 : i32, i32
  }
  func.func @transform_3(%arg0: i32, %arg1: i32) -> (i32, i32, i32) {
    %c0_i32 = arith.constant 0 : i32
    %c0_i32_0 = arith.constant 0 : i32
    return %arg0, %arg1, %c0_i32 : i32, i32, i32
  }
}

module attributes {stable_mosaic.version = 11 : i64} {
  func.func @_linear_kernel(%arg0: i32, %arg1: i32, %arg2: memref<1x8x32xf32, #tpu.memory_space<vmem>>, %arg3: memref<32x32xf32, #tpu.memory_space<vmem>>, %arg4: memref<1x32xf32, #tpu.memory_space<vmem>>, %arg5: memref<1x8x32xf32, #tpu.memory_space<vmem>>) attributes {dimension_semantics = [#tpu.dimension_semantics<parallel>, #tpu.dimension_semantics<parallel>], iteration_bounds = array<i64: 2, 1>, scalar_prefetch = 0 : i64, scratch_operands = 0 : i64, tpu.core_type = #tpu.core_type<tc>, window_params = [{transform_indices = @transform_0, window_bounds = array<i64: 1, 8, 32>}, {pipeline_mode = #tpu.pipeline_mode<synchronous>, transform_indices = @transform_1, window_bounds = array<i64: 32, 32>}, {pipeline_mode = #tpu.pipeline_mode<synchronous>, transform_indices = @transform_2, window_bounds = array<i64: 1, 32>}, {transform_indices = @transform_3, window_bounds = array<i64: 1, 8, 32>}]} {
    %c0 = arith.constant 0 : index
    %c0_0 = arith.constant 0 : index
    %c0_1 = arith.constant 0 : index
    %0 = vector.load %arg2[%c0, %c0_0, %c0_1] : memref<1x8x32xf32, #tpu.memory_space<vmem>>, vector<1x8x32xf32>
    %1 = vector.shape_cast %0 : vector<1x8x32xf32> to vector<8x32xf32>
    %c0_2 = arith.constant 0 : index
    %c0_3 = arith.constant 0 : index
    %2 = vector.load %arg3[%c0_2, %c0_3] : memref<32x32xf32, #tpu.memory_space<vmem>>, vector<32x32xf32>
    %cst = arith.constant dense<0.000000e+00> : vector<8x32xf32>
    %3 = tpu.matmul %1, %2, %cst {dimension_numbers = #tpu.dot_dimension_numbers<[1], [0], [0], [1], [0, 0, 1, 1], [], []>} : vector<8x32xf32>, vector<32x32xf32>, vector<8x32xf32> -> vector<8x32xf32>
    %c0_4 = arith.constant 0 : index
    %c0_5 = arith.constant 0 : index
    %4 = vector.load %arg4[%c0_4, %c0_5] : memref<1x32xf32, #tpu.memory_space<vmem>>, vector<1x32xf32>
    %5 = vector.broadcast %4 : vector<1x32xf32> to vector<8x32xf32>
    %6 = arith.addf %3, %5 : vector<8x32xf32>
    %c0_6 = arith.constant 0 : index
    %c0_7 = arith.constant 0 : index
    %c0_8 = arith.constant 0 : index
    %7 = vector.load %arg5[%c0_6, %c0_7, %c0_8] : memref<1x8x32xf32, #tpu.memory_space<vmem>>, vector<1x8x32xf32>
    %8 = vector.shape_cast %7 : vector<1x8x32xf32> to vector<8x32xf32>
    %9 = vector.shape_cast %6 : vector<8x32xf32> to vector<1x8x32xf32>
    tpu.vector_store %arg5[%c0_6, %c0_7, %c0_8], %9 {strides = array<i32>} : memref<1x8x32xf32, #tpu.memory_space<vmem>>, vector<1x8x32xf32>,
    return
  }
  func.func @transform_0(%arg0: i32, %arg1: i32) -> (i32, i32, i32) {
    %c0_i32 = arith.constant 0 : i32
    %c0_i32_0 = arith.constant 0 : i32
    return %arg0, %arg1, %c0_i32 : i32, i32, i32
  }
  func.func @transform_1(%arg0: i32, %arg1: i32) -> (i32, i32) {
    %c0_i32 = arith.constant 0 : i32
    %c0_i32_0 = arith.constant 0 : i32
    %c0_i32_1 = arith.constant 0 : i32
    return %c0_i32, %c0_i32_0 : i32, i32
  }
  func.func @transform_2(%arg0: i32, %arg1: i32) -> (i32, i32) {
    %c0_i32 = arith.constant 0 : i32
    %c0_i32_0 = arith.constant 0 : i32
    %c0_i32_1 = arith.constant 0 : i32
    return %c0_i32, %c0_i32_0 : i32, i32
  }
  func.func @transform_3(%arg0: i32, %arg1: i32) -> (i32, i32, i32) {
    %c0_i32 = arith.constant 0 : i32
    %c0_i32_0 = arith.constant 0 : i32
    return %arg0, %arg1, %c0_i32 : i32, i32, i32
  }
}

module attributes {stable_mosaic.version = 11 : i64} {
  func.func @_linear_kernel(%arg0: i32, %arg1: i32, %arg2: memref<1x8x32xf32, #tpu.memory_space<vmem>>, %arg3: memref<32x32xf32, #tpu.memory_space<vmem>>, %arg4: memref<1x32xf32, #tpu.memory_space<vmem>>, %arg5: memref<1x8x32xf32, #tpu.memory_space<vmem>>) attributes {dimension_semantics = [#tpu.dimension_semantics<parallel>, #tpu.dimension_semantics<parallel>], iteration_bounds = array<i64: 2, 1>, scalar_prefetch = 0 : i64, scratch_operands = 0 : i64, tpu.core_type = #tpu.core_type<tc>, window_params = [{transform_indices = @transform_0, window_bounds = array<i64: 1, 8, 32>}, {pipeline_mode = #tpu.pipeline_mode<synchronous>, transform_indices = @transform_1, window_bounds = array<i64: 32, 32>}, {pipeline_mode = #tpu.pipeline_mode<synchronous>, transform_indices = @transform_2, window_bounds = array<i64: 1, 32>}, {transform_indices = @transform_3, window_bounds = array<i64: 1, 8, 32>}]} {
    %c0 = arith.constant 0 : index
    %c0_0 = arith.constant 0 : index
    %c0_1 = arith.constant 0 : index
    %0 = vector.load %arg2[%c0, %c0_0, %c0_1] : memref<1x8x32xf32, #tpu.memory_space<vmem>>, vector<1x8x32xf32>
    %1 = vector.shape_cast %0 : vector<1x8x32xf32> to vector<8x32xf32>
    %c0_2 = arith.constant 0 : index
    %c0_3 = arith.constant 0 : index
    %2 = vector.load %arg3[%c0_2, %c0_3] : memref<32x32xf32, #tpu.memory_space<vmem>>, vector<32x32xf32>
    %cst = arith.constant dense<0.000000e+00> : vector<8x32xf32>
    %3 = tpu.matmul %1, %2, %cst {dimension_numbers = #tpu.dot_dimension_numbers<[1], [0], [0], [1], [0, 0, 1, 1], [], []>} : vector<8x32xf32>, vector<32x32xf32>, vector<8x32xf32> -> vector<8x32xf32>
    %c0_4 = arith.constant 0 : index
    %c0_5 = arith.constant 0 : index
    %4 = vector.load %arg4[%c0_4, %c0_5] : memref<1x32xf32, #tpu.memory_space<vmem>>, vector<1x32xf32>
    %5 = vector.broadcast %4 : vector<1x32xf32> to vector<8x32xf32>
    %6 = arith.addf %3, %5 : vector<8x32xf32>
    %c0_6 = arith.constant 0 : index
    %c0_7 = arith.constant 0 : index
    %c0_8 = arith.constant 0 : index
    %7 = vector.load %arg5[%c0_6, %c0_7, %c0_8] : memref<1x8x32xf32, #tpu.memory_space<vmem>>, vector<1x8x32xf32>
    %8 = vector.shape_cast %7 : vector<1x8x32xf32> to vector<8x32xf32>
    %9 = vector.shape_cast %6 : vector<8x32xf32> to vector<1x8x32xf32>
    tpu.vector_store %arg5[%c0_6, %c0_7, %c0_8], %9 {strides = array<i32>} : memref<1x8x32xf32, #tpu.memory_space<vmem>>, vector<1x8x32xf32>,
    return
  }
  func.func @transform_0(%arg0: i32, %arg1: i32) -> (i32, i32, i32) {
    %c0_i32 = arith.constant 0 : i32
    %c0_i32_0 = arith.constant 0 : i32
    return %arg0, %arg1, %c0_i32 : i32, i32, i32
  }
  func.func @transform_1(%arg0: i32, %arg1: i32) -> (i32, i32) {
    %c0_i32 = arith.constant 0 : i32
    %c0_i32_0 = arith.constant 0 : i32
    %c0_i32_1 = arith.constant 0 : i32
    return %c0_i32, %c0_i32_0 : i32, i32
  }
  func.func @transform_2(%arg0: i32, %arg1: i32) -> (i32, i32) {
    %c0_i32 = arith.constant 0 : i32
    %c0_i32_0 = arith.constant 0 : i32
    %c0_i32_1 = arith.constant 0 : i32
    return %c0_i32, %c0_i32_0 : i32, i32
  }
  func.func @transform_3(%arg0: i32, %arg1: i32) -> (i32, i32, i32) {
    %c0_i32 = arith.constant 0 : i32
    %c0_i32_0 = arith.constant 0 : i32
    return %arg0, %arg1, %c0_i32 : i32, i32, i32
  }
}

module attributes {stable_mosaic.version = 11 : i64} {
  func.func @_attn_kernel_with_a(%arg0: i32, %arg1: i32, %arg2: i32, %arg3: memref<1x1x8x8xf32, #tpu.memory_space<vmem>>, %arg4: memref<1x1x8x8xf32, #tpu.memory_space<vmem>>, %arg5: memref<1x1x8x8xf32, #tpu.memory_space<vmem>>, %arg6: memref<1x1x8x8xf32, #tpu.memory_space<vmem>>, %arg7: memref<1x1x8x8xf32, #tpu.memory_space<vmem>>) attributes {dimension_semantics = [#tpu.dimension_semantics<parallel>, #tpu.dimension_semantics<parallel>, #tpu.dimension_semantics<parallel>], iteration_bounds = array<i64: 2, 4, 1>, scalar_prefetch = 0 : i64, scratch_operands = 0 : i64, tpu.core_type = #tpu.core_type<tc>, window_params = [{transform_indices = @transform_0, window_bounds = array<i64: 1, 1, 8, 8>}, {transform_indices = @transform_1, window_bounds = array<i64: 1, 1, 8, 8>}, {transform_indices = @transform_2, window_bounds = array<i64: 1, 1, 8, 8>}, {transform_indices = @transform_3, window_bounds = array<i64: 1, 1, 8, 8>}, {transform_indices = @transform_4, window_bounds = array<i64: 1, 1, 8, 8>}]} {
    %c0 = arith.constant 0 : index
    %c0_0 = arith.constant 0 : index
    %c0_1 = arith.constant 0 : index
    %c0_2 = arith.constant 0 : index
    %0 = vector.load %arg3[%c0, %c0_0, %c0_1, %c0_2] : memref<1x1x8x8xf32, #tpu.memory_space<vmem>>, vector<1x1x8x8xf32>
    %1 = vector.shape_cast %0 : vector<1x1x8x8xf32> to vector<8x8xf32>
    %cst = arith.constant 0.353553385 : f32
    %2 = vector.broadcast %cst : f32 to vector<8x8xf32>
    %3 = arith.mulf %1, %2 : vector<8x8xf32>
    %c0_3 = arith.constant 0 : index
    %c0_4 = arith.constant 0 : index
    %c0_5 = arith.constant 0 : index
    %c0_6 = arith.constant 0 : index
    %4 = vector.load %arg4[%c0_3, %c0_4, %c0_5, %c0_6] : memref<1x1x8x8xf32, #tpu.memory_space<vmem>>, vector<1x1x8x8xf32>
    %5 = vector.shape_cast %4 : vector<1x1x8x8xf32> to vector<8x8xf32>
    %c0_7 = arith.constant 0 : index
    %c0_8 = arith.constant 0 : index
    %c0_9 = arith.constant 0 : index
    %c0_10 = arith.constant 0 : index
    %6 = vector.load %arg5[%c0_7, %c0_8, %c0_9, %c0_10] : memref<1x1x8x8xf32, #tpu.memory_space<vmem>>, vector<1x1x8x8xf32>
    %7 = vector.shape_cast %6 : vector<1x1x8x8xf32> to vector<8x8xf32>
    %cst_11 = arith.constant dense<0.000000e+00> : vector<8x8xf32>
    %8 = tpu.matmul %3, %5, %cst_11 {dimension_numbers = #tpu.dot_dimension_numbers<[1], [1], [0], [0], [0, 0, 1, 0], [], []>} : vector<8x8xf32>, vector<8x8xf32>, vector<8x8xf32> -> vector<8x8xf32>
    %cst_12 = arith.constant dense<0xFF800000> : vector<8xf32>
    %9 = vector.multi_reduction <maximumf>, %8, %cst_12 [1] : vector<8x8xf32> to vector<8xf32>
    %10 = vector.shape_cast %9 : vector<8xf32> to vector<8x1xf32>
    %11 = vector.broadcast %10 : vector<8x1xf32> to vector<8x8xf32>
    %12 = arith.subf %8, %11 : vector<8x8xf32>
    %13 = math.exp %12 : vector<8x8xf32>
    %cst_13 = arith.constant dense<0.000000e+00> : vector<8xf32>
    %14 = vector.multi_reduction <add>, %13, %cst_13 [1] : vector<8x8xf32> to vector<8xf32>
    %15 = vector.shape_cast %14 : vector<8xf32> to vector<8x1xf32>
    %16 = tpu.reciprocal %15 : vector<8x1xf32> -> vector<8x1xf32>
    %17 = vector.broadcast %16 : vector<8x1xf32> to vector<8x8xf32>
    %18 = arith.mulf %13, %17 : vector<8x8xf32>
    %c0_14 = arith.constant 0 : index
    %c0_15 = arith.constant 0 : index
    %c0_16 = arith.constant 0 : index
    %c0_17 = arith.constant 0 : index
    %19 = vector.load %arg7[%c0_14, %c0_15, %c0_16, %c0_17] : memref<1x1x8x8xf32, #tpu.memory_space<vmem>>, vector<1x1x8x8xf32>
    %20 = vector.shape_cast %19 : vector<1x1x8x8xf32> to vector<8x8xf32>
    %21 = vector.shape_cast %18 : vector<8x8xf32> to vector<1x1x8x8xf32>
    tpu.vector_store %arg7[%c0_14, %c0_15, %c0_16, %c0_17], %21 {strides = array<i32>} : memref<1x1x8x8xf32, #tpu.memory_space<vmem>>, vector<1x1x8x8xf32>,
    %cst_18 = arith.constant dense<0.000000e+00> : vector<8x8xf32>
    %22 = tpu.matmul %18, %7, %cst_18 {dimension_numbers = #tpu.dot_dimension_numbers<[1], [0], [0], [1], [0, 0, 1, 1], [], []>} : vector<8x8xf32>, vector<8x8xf32>, vector<8x8xf32> -> vector<8x8xf32>
    %c0_19 = arith.constant 0 : index
    %c0_20 = arith.constant 0 : index
    %c0_21 = arith.constant 0 : index
    %c0_22 = arith.constant 0 : index
    %23 = vector.load %arg6[%c0_19, %c0_20, %c0_21, %c0_22] : memref<1x1x8x8xf32, #tpu.memory_space<vmem>>, vector<1x1x8x8xf32>
    %24 = vector.shape_cast %23 : vector<1x1x8x8xf32> to vector<8x8xf32>
    %25 = vector.shape_cast %22 : vector<8x8xf32> to vector<1x1x8x8xf32>
    tpu.vector_store %arg6[%c0_19, %c0_20, %c0_21, %c0_22], %25 {strides = array<i32>} : memref<1x1x8x8xf32, #tpu.memory_space<vmem>>, vector<1x1x8x8xf32>,
    return
  }
  func.func @transform_0(%arg0: i32, %arg1: i32, %arg2: i32) -> (i32, i32, i32, i32) {
    %c0_i32 = arith.constant 0 : i32
    %c0_i32_0 = arith.constant 0 : i32
    return %arg0, %arg1, %arg2, %c0_i32 : i32, i32, i32, i32
  }
  func.func @transform_1(%arg0: i32, %arg1: i32, %arg2: i32) -> (i32, i32, i32, i32) {
    %c0_i32 = arith.constant 0 : i32
    %c0_i32_0 = arith.constant 0 : i32
    %c0_i32_1 = arith.constant 0 : i32
    return %arg0, %arg1, %c0_i32, %c0_i32_0 : i32, i32, i32, i32
  }
  func.func @transform_2(%arg0: i32, %arg1: i32, %arg2: i32) -> (i32, i32, i32, i32) {
    %c0_i32 = arith.constant 0 : i32
    %c0_i32_0 = arith.constant 0 : i32
    %c0_i32_1 = arith.constant 0 : i32
    return %arg0, %arg1, %c0_i32, %c0_i32_0 : i32, i32, i32, i32
  }
  func.func @transform_3(%arg0: i32, %arg1: i32, %arg2: i32) -> (i32, i32, i32, i32) {
    %c0_i32 = arith.constant 0 : i32
    %c0_i32_0 = arith.constant 0 : i32
    return %arg0, %arg1, %arg2, %c0_i32 : i32, i32, i32, i32
  }
  func.func @transform_4(%arg0: i32, %arg1: i32, %arg2: i32) -> (i32, i32, i32, i32) {
    %c0_i32 = arith.constant 0 : i32
    %c0_i32_0 = arith.constant 0 : i32
    return %arg0, %arg1, %arg2, %c0_i32 : i32, i32, i32, i32
  }
}

</mosaic_0001>

<bundles_post_ra>
// kernel: attention_layer_forward.5
= control target key start
LH: loop header
LB: loop body
LE: loop exit
PB: predicated region body
PF: predicated region fallthrough
CT: control target
= control target key end

     0   :  { %s465_s12 = smov 0   ;;  %s467_s13 = smov 0   ;;  %s513_s0 = inlined_call_operand.vmem [shape: f32[2,8,32], index: 0, kind: input, shape index: {}]   ;;  %s514_s1 = inlined_call_operand.vmem [shape: f32[32,32], index: 1, kind: input, shape index: {}]   ;;  %s515_s2 = inlined_call_operand.vmem [shape: f32[1,32], index: 2, kind: input, shape index: {}]   ;;  %s516_s3 = inlined_call_operand.vmem [shape: f32[2,8,32], index: 3, kind: output, shape index: {}]  }
   0x1   :  { %s469_s14 = smov 0  }
   0x2 LB: > { %s25_s15 = sadd.s32 1, %s436_s13  ;;  %p362_p0 = scmp.ge.s32.totalorder %s440_s14, 1  ;;  %s440_s14 = sphi %s469_s14, %s13_s14   ;;  %s436_s13 = sphi %s467_s13, %s518_s13   ;;  %s432_s12 = sphi %s465_s12, %s517_s12  }
   0x3   : > { %p27_p1 = scmp.ge.s32.totalorder %s25_s15, 2  ;;  %p155_p2 = scmp.lt.s32.totalorder %s440_s14, 3 }
   0x5   : > { %s520_s15 = smov (%p27_p1, %s25_s15), 0  ;;  %p156_p3 = pnand %p362_p0, %p155_p2 }
   0x6   : > { %v198_v0 = vld [vmem:[%s514_s1] sm:$0xff] (!%p156_p3)  ;;  %v199_v1 = vld [vmem:[%s514_s1 + $0x8] sm:$0xff] (!%p156_p3)  ;;  %v200_v2 = vld [vmem:[%s514_s1 + $0x10] sm:$0xff] (!%p156_p3)  ;;  %v442_v3 = vmov (!%p156_p3), 0.0|0.0   ;;  %vm443_vm0 = vmmov (!%p156_p3), 0   ;;  %v444_v6 = vmov (!%p156_p3), 0.0  }
   0x7   : > { %159 = sbr.rel (%p156_p3) target bundleno = 233 (0xe9), region = 32  ;;  %385 = vmatprep.subr.bf16.mxu0 (!%p156_p3), %v442_v3  ;;  %v386_v4 = vpack.c.bf16 (!%p156_p3), %v199_v1, %v198_v0  ;;  %v201_v5 = vld [vmem:[%s514_s1 + $0x18] sm:$0xff] (!%p156_p3)  ;;  %382 = vmatprep.mubr.msk.f32.mxu0 (!%p156_p3), %vm443_vm0, %v444_v6  ;;  %p183_p4 = scmp.lt.s32.totalorder (!%p156_p3), %s432_s12, 1  ;;  %vm209_vm1 = vcmask (!%p156_p3), 261120   ;;  %v365_v9 = vld [vmem:[%s515_s2] ss:$0 sm:$0xff] (!%p156_p3) }
   0x8   : > { %v389_v7 = vpack.c.bf16 (!%p156_p3), %v201_v5, %v200_v2 }
   0x9   : > { %387 = vmatpush3.bf16.msra.mxu0 (!%p156_p3), %v386_v4 }
   0xa   : > { %388 = vmatprep.subr.bf16.mxu0 (!%p156_p3), %v442_v3 }
   0xd   : > { %390 = vmatpush3.bf16.msra.mxu0 (!%p156_p3), %v389_v7 }
   0xe   : > { %s522_s12 = smov (!%p183_p4, %s432_s12), 1 }
   0xf   : > { %s363_s24 = sshll.u32 %s522_s12, 3 }
  0x10   : > { %s189_s27 = scalar_lea.vmem %s513_s0, %s363_s24  ;;  %s196_s5 = scalar_lea.vmem %s516_s3, %s363_s24 }
  0x11   : > { %v197_v8 = vld [vmem:[%s189_s27] sm:$0xff] }
  0x12   : > { %383 = vmatmul.mubr.msk.f32.vlgmr.msra.gmra.mrb[0].mxu0 %vm209_vm1, %v197_v8 }
  0xe5   : > { %v279_v10 = vpop.f32.mrb[0].mxu0 }
  0xe6   : > { %v280_v11 = vadd.f32 %v365_v9, %v279_v10  ;;  %v384_v12 = vpop.f32.mrb[1].mxu0 }
  0xe8   : > { %283 = vst.msk [vmem:[%s196_s5] sm:$0xff] %vm209_vm1, %v280_v11 }
  0xe9 PF: > { %s13_s14 = sadd.s32 1, %s440_s14   ;;  %s517_s12 = smov %s436_s13 }
  0xea   : > { %p10_p5 = scmp.ge.s32.totalorder %s13_s14, 4   ;;  %s518_s13 = smov %s520_s15 }
  0xec   :  { %12 = sbr.rel (!%p10_p5) target bundleno = 2 (0x2), region = 62 }

// kernel: attention_layer_forward.6
= control target key start
LH: loop header
LB: loop body
LE: loop exit
PB: predicated region body
PF: predicated region fallthrough
CT: control target
= control target key end

     0   :  { %8 = vsyncpa [#allocation3], 0  ;;  %s543_s12 = smov 0   ;;  %s545_s13 = smov 0   ;;  %s622_s0 = inlined_call_operand.vmem [shape: f32[2,8,32], index: 0, kind: input, shape index: {}]   ;;  %s623_s1 = inlined_call_operand.hbm [shape: f32[32,32], index: 1, kind: input, shape index: {}]   ;;  %s624_s2 = inlined_call_operand.vmem [shape: f32[1,32], index: 2, kind: input, shape index: {}]   ;;  %s625_s3 = inlined_call_operand.vmem [shape: f32[2,8,32], index: 3, kind: output, shape index: {}]  }
   0x1   :  { %s547_s14 = smov 0  }
   0x2 LB: > { %s386_s15 = sadd.s32 4294967295, %s515_s14   ;;  %s26_s16 = sadd.s32 1, %s511_s13  ;;  %s515_s14 = sphi %s547_s14, %s14_s14   ;;  %s511_s13 = sphi %s545_s13, %s635_s13   ;;  %s507_s12 = sphi %s543_s12, %s634_s12  }
   0x3   : > { %p28_p0 = scmp.ge.s32.totalorder %s26_s16, 2  ;;  %p388_p1 = scmp.ge.s32.totalorder %s515_s14, 1 }
   0x4   : > { %p129_p2 = scmp.lt.s32.totalorder %s515_s14, 3  ;;  %p568_p4 = scmp.eq.s32.totalorder %s386_s15, 0 }
   0x5   : > { %s637_s16 = smov (%p28_p0, %s26_s16), 0  ;;  %s517_s19 = smov [#allocation2]  }
   0x6   : > { %p564_p3 = pnand %p388_p1, %p129_p2  ;;  %s141_s20 = sshll.u32 %s517_s19, 4  ;;  %s142_s20 = int_to_ptr.vmem [resolvable:$true] %s141_s20 }
   0x7   : > { %s630_s18 = scalar_select %p568_p4, 1, 0 }
   0x8   : > { %s629_s17 = scalar_select %p564_p3, 1, 0 }
   0x9   : > { %p425_p5 = pneg %p564_p3  ;;  %s461_s24 = scalar_lea.hbm %s623_s1, 512 }
   0xa   : > { %p462_p7 = scmp.ne.s32.totalorder %s623_s1, %s461_s24  ;;  %p468_p11 = scmp.lt.u32.totalorder %s461_s24, %s623_s1 }
   0xb   : > { %p576_p6 = pnand %p568_p4, %p425_p5 }
   0xd   : > { %p463_p8 = pneg %p576_p6 }
   0xf   : > { %p464_p9 = pnand %p463_p8, %p462_p7 }
  0x11   : > { %p465_p10 = pneg %p464_p9 }
  0x13   : > { %p470_p12 = pnand %p468_p11, %p465_p10 }
  0x15   : > { %473 = shalt.err (!%p470_p12)
}
  0x16   : > { %s474_s29 = scalar_lea.vmem %s142_s20, 512  ;;  %p482_p2 = scmp.lt.s32.totalorder %s142_s20, %s142_s20 }
  0x17   : > { %p475_p13 = scmp.ne.s32.totalorder %s142_s20, %s474_s29  ;;  %p483_p5 = scmp.lt.s32.totalorder %s474_s29, %s474_s29 }
  0x19   : > { %p477_p0 = pnand %p475_p13, %p463_p8  ;;  %p484_p4 = por %p483_p5, %p482_p2 }
  0x1b   : > { %p478_p1 = pneg %p477_p0 }
  0x1d   : > { %p485_p3 = pnand %p484_p4, %p478_p1 }
  0x1f   : > { %488 = shalt.err (!%p485_p3)
}
  0x20   : > { %s518_s30 = smov 128   ;;  %s519_s4 = smov 8  }
  0x21   : > { %428 = dma.hbm_to_vmem [thread:$0]  (!%p576_p6), %s623_s1, 512, %s142_s20, [#allocation3], %s518_s30, %s518_s30, %s519_s4  }
  0x22   : > { %p632_p7 = scmp.ne.s32.totalorder %s629_s17, 0 }
  0x23   : > { %p633_p9 = scmp.ne.s32.totalorder (!%p632_p7), %s630_s18, 0 }
  0x24   : > { %170 = sbr.rel (%p632_p7) target bundleno = 270 (0x10e), region = 32 }
  0x2b   : > { %502 = dma.done.wait (%p633_p9), [#allocation3], 512  }
  0x2c   : > { %504 = vsyncadd (%p633_p9), [#allocation3], 4294966784  ;;  %p198_p3 = scmp.lt.s32.totalorder %s507_s12, 1  ;;  %v520_v0 = vmov 0.0|0.0   ;;  %vm521_vm0 = vmmov 0   ;;  %v522_v1 = vmov 0.0  }
  0x2d   : > { %415 = vmatprep.subr.bf16.mxu0 %v520_v0  ;;  %412 = vmatprep.mubr.msk.f32.mxu0 %vm521_vm0, %v522_v1  ;;  %v213_v2 = vld [vmem:[#allocation2] sm:$0xff]  ;;  %v214_v3 = vld [vmem:[#allocation2 + $0x8] sm:$0xff]  ;;  %v215_v4 = vld [vmem:[#allocation2 + $0x10] sm:$0xff]  ;;  %vm224_vm1 = vcmask 261120  }
  0x2e   : > { %s639_s12 = smov (!%p198_p3, %s507_s12), 1  ;;  %v416_v5 = vpack.c.bf16 %v214_v3, %v213_v2  ;;  %v216_v6 = vld [vmem:[#allocation2 + $0x18] sm:$0xff]  ;;  %v395_v9 = vld [vmem:[%s624_s2] ss:$0 sm:$0xff] }
  0x2f   : > { %s393_s7 = sshll.u32 %s639_s12, 3  ;;  %v419_v7 = vpack.c.bf16 %v216_v6, %v215_v4 }
  0x30   : > { %417 = vmatpush3.bf16.msra.mxu0 %v416_v5  ;;  %s204_s10 = scalar_lea.vmem %s622_s0, %s393_s7  ;;  %s211_s19 = scalar_lea.vmem %s625_s3, %s393_s7 }
  0x31   : > { %418 = vmatprep.subr.bf16.mxu0 %v520_v0  ;;  %v212_v8 = vld [vmem:[%s204_s10] sm:$0xff] }
  0x34   : > { %420 = vmatpush3.bf16.msra.mxu0 %v419_v7 }
  0x37   : > { %413 = vmatmul.mubr.msk.f32.vlgmr.msra.gmra.mrb[0].mxu0 %vm224_vm1, %v212_v8 }
 0x10a   : > { %v294_v10 = vpop.f32.mrb[0].mxu0 }
 0x10b   : > { %v295_v11 = vadd.f32 %v395_v9, %v294_v10  ;;  %v414_v12 = vpop.f32.mrb[1].mxu0 }
 0x10d   : > { %298 = vst.msk [vmem:[%s211_s19] sm:$0xff] %vm224_vm1, %v295_v11 }
 0x10e PF: > { %s14_s14 = sadd.s32 1, %s515_s14   ;;  %s634_s12 = smov %s511_s13 }
 0x10f   : > { %p11_p4 = scmp.ge.s32.totalorder %s14_s14, 4   ;;  %s635_s13 = smov %s637_s16 }
 0x111   :  { %13 = sbr.rel (!%p11_p4) target bundleno = 2 (0x2), region = 67 }
 0x118   :  { %324 = vsyncpa [#allocation3], 1 }
 0x119   :  { %326 = vsyncpa [#allocation3 + $0x1], 1 }

// kernel: attention_layer_forward.9
= control target key start
LH: loop header
LB: loop body
LE: loop exit
PB: predicated region body
PF: predicated region fallthrough
CT: control target
= control target key end

     0   :  { %8 = vsyncpa [#allocation3], 0  ;;  %s688_s0 = inlined_call_operand.vmem [shape: f32[2,8,32], index: 0, kind: input, shape index: {}]   ;;  %s689_s1 = inlined_call_operand.vmem [shape: f32[32,32], index: 1, kind: input, shape index: {}]   ;;  %s690_s2 = inlined_call_operand.vmem [shape: f32[1,32], index: 2, kind: input, shape index: {}]   ;;  %s691_s3 = inlined_call_operand.hbm [shape: f32[2,8,32], index: 3, kind: output, shape index: {}]  }
   0x1   :  { %10 = vsyncpa [#allocation3 + $0x1], 0  ;;  %s561_s12 = smov 0   ;;  %s563_s13 = smov 0  }
   0x2   :  { %s565_s14 = smov 0   ;;  %s567_s15 = smov 0  }
   0x3   :  { %s569_s16 = smov 0   ;;  %s571_s17 = smov 0  }
   0x4 LB: > { %s364_s18 = sadd.s32 4294967295, %s535_s17   ;;  %s365_s19 = sadd.s32 4294967294, %s535_s17   ;;  %s535_s17 = sphi %s571_s17, %s16_s17   ;;  %s531_s16 = sphi %s569_s16, %s698_s16   ;;  %s527_s15 = sphi %s567_s15, %s697_s15   ;;  %s523_s14 = sphi %s565_s14, %s696_s14   ;;  %s519_s13 = sphi %s563_s13, %s695_s13   ;;  %s515_s12 = sphi %s561_s12, %s694_s12  }
   0x5   : > { %s28_s20 = sadd.s32 1, %s531_s16  ;;  %s107_s21 = sadd.s32 1, %s523_s14 }
   0x6   : > { %p30_p0 = scmp.ge.s32.totalorder %s28_s20, 2  ;;  %p117_p1 = scmp.ne.s32.totalorder %s523_s14, %s519_s13 }
   0x7   : > { %p118_p2 = scmp.eq.s32.totalorder %s364_s18, 1  ;;  %p123_p3 = scmp.ne.s32.totalorder %s519_s13, %s515_s12 }
   0x8   : > { %s700_s20 = smov (%p30_p0, %s28_s20), 0  ;;  %p124_p5 = scmp.eq.s32.totalorder %s365_s19, 1 }
   0x9   : > { %p601_p4 = por %p118_p2, %p117_p1  ;;  %s102_s23 = ssub.s32 %s531_s16, %s700_s20 }
   0xa   : > { %p368_p6 = scmp.ge.s32.totalorder %s535_s17, 1  ;;  %p105_p7 = scmp.eq.s32.totalorder %s102_s23, 0 }
   0xb   : > { %p608_p8 = por %p124_p5, %p123_p3  ;;  %p158_p9 = scmp.lt.s32.totalorder %s535_s17, 3 }
   0xc   : > { %s614_s25 = scalar_select %p105_p7, %s523_s14, %s107_s21  }
   0xd   : > { %p159_p10 = pnand %p368_p6, %p158_p9 }
   0xe   : > { %v192_v0 = vld [vmem:[%s689_s1] sm:$0xff] (!%p159_p10)  ;;  %v193_v1 = vld [vmem:[%s689_s1 + $0x8] sm:$0xff] (!%p159_p10)  ;;  %v194_v2 = vld [vmem:[%s689_s1 + $0x10] sm:$0xff] (!%p159_p10)  ;;  %v537_v3 = vmov (!%p159_p10), 0.0|0.0   ;;  %vm538_vm0 = vmmov (!%p159_p10), 0   ;;  %v539_v6 = vmov (!%p159_p10), 0.0  }
   0xf   : > { %162 = sbr.rel (%p159_p10) target bundleno = 255 (0xff), region = 32  ;;  %393 = vmatprep.subr.bf16.mxu0 (!%p159_p10), %v537_v3  ;;  %v394_v4 = vpack.c.bf16 (!%p159_p10), %v193_v1, %v192_v0  ;;  %v195_v5 = vld [vmem:[%s689_s1 + $0x18] sm:$0xff] (!%p159_p10)  ;;  %390 = vmatprep.mubr.msk.f32.mxu0 (!%p159_p10), %vm538_vm0, %v539_v6  ;;  %p184_p11 = scmp.lt.s32.totalorder (!%p159_p10), %s527_s15, 1  ;;  %vm203_vm1 = vcmask (!%p159_p10), 261120   ;;  %v371_v9 = vld [vmem:[%s690_s2] ss:$0 sm:$0xff] (!%p159_p10) }
  0x10   : > { %v397_v7 = vpack.c.bf16 (!%p159_p10), %v195_v5, %v194_v2  ;;  %s181_s18 = sand.u32 (!%p159_p10), 1, %s519_s13   ;;  %s374_s26 = sshll.u32 (!%p159_p10), %s527_s15, 7 }
  0x11   : > { %395 = vmatpush3.bf16.msra.mxu0 (!%p159_p10), %v394_v4  ;;  %s369_s19 = sshll.u32 (!%p159_p10), %s181_s18, 3  ;;  %s641_s4 = scalar_lea.hbm (!%p159_p10), %s691_s3, %s374_s26 }
  0x12   : > { %396 = vmatprep.subr.bf16.mxu0 (!%p159_p10), %v537_v3  ;;  %s183_s27 = scalar_lea.vmem (!%p159_p10), [#allocation2], %s369_s19  ;;  %s279_s5 = scalar_lea.sflag (!%p159_p10), [#allocation3], %s181_s18 }
  0x13   : > { %s293_s28 = sshll.u32 (!%p159_p10), %s183_s27, 4  ;;  %s643_s28 = int_to_ptr.vmem [resolvable:$true] %s293_s28 }
  0x14   : > { %s457_s6 = scalar_lea.vmem (!%p159_p10), %s643_s28, 128 }
  0x15   : > { %398 = vmatpush3.bf16.msra.mxu0 (!%p159_p10), %v397_v7  ;;  %p458_p12 = scmp.ne.s32.totalorder (!%p159_p10), %s643_s28, %s457_s6 }
  0x16   : > { %s185_s7 = scalar_select %p184_p11, %s527_s15, 1 }
  0x17   : > { %p459_p13 = pnand %p458_p12, %p601_p4  ;;  %s540_s15 = smov [#allocation2]  }
  0x18   : > { %s370_s8 = sshll.u32 %s185_s7, 3  ;;  %s461_s7 = sshll.u32 %s540_s15, 4  ;;  %s462_s7 = int_to_ptr.vmem [resolvable:$false] %s461_s7 }
  0x19   : > { %s190_s11 = scalar_lea.vmem %s688_s0, %s370_s8  ;;  %p460_p0 = pneg %p459_p13 }
  0x1a   : > { %v191_v8 = vld [vmem:[%s190_s11] sm:$0xff]  ;;  %s463_s8 = scalar_lea.vmem %s462_s7, 256  ;;  %p464_p1 = scmp.lt.s32.totalorder %s643_s28, %s462_s7 }
  0x1b   : > { %391 = vmatmul.mubr.msk.f32.vlgmr.msra.gmra.mrb[0].mxu0 %vm203_vm1, %v191_v8  ;;  %p465_p2 = scmp.lt.s32.totalorder %s463_s8, %s457_s6 }
  0x1d   : > { %p466_p3 = por %p465_p2, %p464_p1 }
  0x1f   : > { %p467_p5 = pnand %p466_p3, %p460_p0 }
  0xee   : > { %v273_v10 = vpop.f32.mrb[0].mxu0 }
  0xef   : > { %v274_v11 = vadd.f32 %v371_v9, %v273_v10  ;;  %v392_v12 = vpop.f32.mrb[1].mxu0 }
  0xf1   : > { %277 = vst.msk [vmem:[%s183_s27] sm:$0xff] %vm203_vm1, %v274_v11 }
  0xf2   : > { %470 = shalt.err (!%p467_p5)
}
  0xf3   : > { %s471_s9 = scalar_lea.hbm %s641_s4, 128  ;;  %s475_s18 = scalar_lea.hbm %s691_s3, 256 }
  0xf4   : > { %p472_p6 = scmp.ne.s32.totalorder %s641_s4, %s471_s9  ;;  %p476_p10 = scmp.lt.u32.totalorder %s641_s4, %s691_s3 }
  0xf5   : > { %p477_p11 = scmp.lt.u32.totalorder %s475_s18, %s471_s9  ;;  %p479_p13 = scmp.lt.u32.totalorder %s471_s9, %s641_s4 }
  0xf6   : > { %p473_p7 = pnand %p472_p6, %p601_p4 }
  0xf7   : > { %p478_p12 = por %p477_p11, %p476_p10 }
  0xf8   : > { %p474_p9 = pneg %p473_p7 }
  0xf9   : > { %p480_p0 = por %p479_p13, %p478_p12 }
  0xfb   : > { %p481_p1 = pnand %p480_p0, %p474_p9 }
  0xfd   : > { %484 = shalt.err (!%p481_p1)
}
  0xfe   : > { %399 = dma.vmem_to_hbm [thread:$0]  (%p601_p4), %s643_s28, 128, %s641_s4, %s279_s5  }
  0xff PF: > { %p405_p2 = scmp.ge.s32.totalorder %s535_s17, 2  ;;  %s305_s23 = sand.u32 1, %s515_s12  }
 0x100   : > { %s306_s26 = scalar_lea.sflag [#allocation3], %s305_s23 }
 0x101   : > { %p402_p3 = pnand %p405_p2, %p608_p8 }
 0x103   : > { %510 = dma.done.wait (!%p402_p3), %s306_s26, 128  }
 0x104   : > { %512 = vsyncadd (!%p402_p3), %s306_s26, 4294967168  ;;  %s16_s17 = sadd.s32 1, %s535_s17   ;;  %s694_s12 = smov %s519_s13 }
 0x105   : > { %p13_p5 = scmp.ge.s32.totalorder %s16_s17, 4   ;;  %s695_s13 = smov %s523_s14 }
 0x106   : > { %s696_s14 = smov %s614_s25  ;;  %s697_s15 = smov %s531_s16 }
 0x107   : > { %s698_s16 = smov %s700_s20  ;;  %15 = sbr.rel (!%p13_p5) target bundleno = 4 (0x4), region = 67 }
 0x10e   :  { %311 = vsyncpa [#allocation3], 1 }
 0x10f   :  { %313 = vsyncpa [#allocation3 + $0x1], 1 }

// kernel: attention_layer_forward.8
= control target key start
LH: loop header
LB: loop body
LE: loop exit
PB: predicated region body
PF: predicated region fallthrough
CT: control target
= control target key end

     0   :  { %s1084_s0 = inlined_call_operand.vmem [shape: f32[2,4,8,8], index: 0, kind: input, shape index: {}]   ;;  %s1085_s1 = inlined_call_operand.vmem [shape: f32[2,4,8,8], index: 1, kind: input, shape index: {}]   ;;  %s1086_s2 = inlined_call_operand.vmem [shape: f32[2,4,8,8], index: 2, kind: input, shape index: {}]   ;;  %s1087_s3 = inlined_call_operand.vmem [shape: f32[2,4,8,8], index: 3, kind: output, shape index: {0}]   ;;  %s1088_s4 = inlined_call_operand.hbm [shape: f32[2,4,8,8], index: 4, kind: output, shape index: {1}]  }
   0x1   :  { %1089 = sst [smem:[#allocation5_spill]] %s1084_s0 }
   0x2   :  { %1090 = sst [smem:[#allocation6_spill]] %s1085_s1 }
   0x3   :  { %10 = vsyncpa [#allocation3], 0 }
   0x4   :  { %12 = vsyncpa [#allocation3 + $0x1], 0  ;;  %s931_s15 = smov 0   ;;  %s933_s16 = smov 0  }
   0x5   :  { %s935_s17 = smov 0   ;;  %s937_s18 = smov 0  }
   0x6   :  { %s939_s19 = smov 0   ;;  %s941_s20 = smov 0  }
   0x7   :  { %s943_s21 = smov 0   ;;  %s945_s22 = smov 0  }
   0x8 LB: > { %s694_s23 = sadd.s32 4294967295, %s901_s22   ;;  %s695_s24 = sadd.s32 4294967294, %s901_s22   ;;  %s901_s22 = sphi %s945_s22, %s18_s22   ;;  %s897_s21 = sphi %s943_s21, %s1101_s21   ;;  %s893_s20 = sphi %s941_s20, %s1100_s20   ;;  %s889_s19 = sphi %s939_s19, %s1099_s19   ;;  %s885_s18 = sphi %s937_s18, %s1098_s18   ;;  %s881_s17 = sphi %s935_s17, %s1097_s17   ;;  %s877_s16 = sphi %s933_s16, %s1096_s16   ;;  %s873_s15 = sphi %s931_s15, %s1095_s15  }
   0x9   : > { %s33_s25 = sadd.s32 1, %s893_s20  ;;  %s37_s26 = sadd.s32 1, %s897_s21 }
   0xa   : > { %p35_p0 = scmp.ge.s32.totalorder %s33_s25, 4  ;;  %p174_p1 = scmp.ne.s32.totalorder %s881_s17, %s877_s16 }
   0xb   : > { %p175_p2 = scmp.eq.s32.totalorder %s694_s23, 7  ;;  %p180_p5 = scmp.ne.s32.totalorder %s877_s16, %s873_s15 }
   0xc   : > { %s1103_s25 = smov (%p35_p0, %s33_s25), 0  ;;  %s1105_s26 = smov (!%p35_p0, %s37_s26), %s897_s21 }
   0xd   : > { %s158_s27 = ssub.s32 %s893_s20, %s1103_s25  ;;  %p982_p3 = por %p175_p2, %p174_p1 }
   0xe   : > { %p39_p4 = scmp.ge.s32.totalorder %s1105_s26, 2  ;;  %p181_p6 = scmp.eq.s32.totalorder %s695_s24, 7 }
   0xf   : > { %p698_p7 = scmp.ge.s32.totalorder %s901_s22, 1  ;;  %p235_p9 = scmp.lt.s32.totalorder %s901_s22, 9 }
  0x10   : > { %s1107_s26 = smov (%p39_p4, %s1105_s26), 0  ;;  %p991_p8 = por %p181_p6, %p180_p5 }
  0x11   : > { %s157_s30 = ssub.s32 %s897_s21, %s1107_s26  ;;  %s164_s5 = sadd.s32 1, %s881_s17 }
  0x12   : > { %s159_s6 = sor.u32 %s158_s27, %s157_s30  ;;  %p236_p10 = pnand %p698_p7, %p235_p9 }
  0x13   : > { %p162_p11 = scmp.eq.s32.totalorder %s159_s6, 0  ;;  %p294_p12 = scmp.lt.s32.totalorder (!%p236_p10), %s889_s19, 1  ;;  %v903_v0 = vmov (!%p236_p10), 0.0   ;;  %vm904_vm0 = vmmov (!%p236_p10), 0   ;;  %vm336_vm1 = vcmask (!%p236_p10), 64512  }
  0x14   : > { %239 = sbr.rel (%p236_p10) target bundleno = 776 (0x308), region = 32  ;;  %p296_p13 = scmp.lt.s32.totalorder (!%p236_p10), %s885_s18, 3  ;;  %720 = vmatprep.subr.mxu0 (!%p236_p10), %v903_v0  ;;  %722 = vmatprep.mubr.msk.f32.mxu0 (!%p236_p10), %vm904_vm0, %v903_v0 }
  0x15   : > { %s1000_s7 = scalar_select %p162_p11, %s881_s17, %s164_s5  }
  0x16   : > { %725 = vmatprep.subr.mxu1 (!%p236_p10), %v903_v0  ;;  %727 = vmatprep.mubr.msk.f32.mxu1 (!%p236_p10), %vm904_vm0, %v903_v0  ;;  %s1093_s1 = sld [smem:[#allocation6_spill]] (!%p236_p10)  ;;  %s1094_s0 = sld [smem:[#allocation5_spill]] (!%p236_p10) }
  0x17   : > { %s712_s13 = sshll.u32 (!%p236_p10), %s889_s19, 2 }
  0x18   : > { %s526_s14 = sadd.s32 (!%p236_p10), %s885_s18, %s712_s13 }
  0x1b   : > { %s295_s8 = scalar_select %p294_p12, %s889_s19, 1 }
  0x1c   : > { %s297_s9 = scalar_select %p296_p13, %s885_s18, 3 }
  0x1d   : > { %s700_s10 = sshll.u32 %s295_s8, 2 }
  0x1e   : > { %s302_s11 = sadd.s32 %s700_s10, %s297_s9  ;;  %s291_s9 = sand.u32 1, %s877_s16  }
  0x1f   : > { %s1006_s12 = sshll.u32 %s302_s11, 3  ;;  %s699_s10 = sshll.u32 %s291_s9, 3 }
  0x20   : > { %s312_s23 = scalar_lea.vmem %s1093_s1, %s1006_s12  ;;  %s304_s30 = scalar_lea.vmem %s1094_s0, %s1006_s12 }
  0x21   : > { %v334_v1 = vld [vmem:[%s312_s23] sm:$0xff]  ;;  %s320_s8 = scalar_lea.vmem %s1086_s2, %s1006_s12  ;;  %s293_s11 = scalar_lea.vmem [#allocation2], %s699_s10 }
  0x22   : > { %v332_v2 = vld [vmem:[%s304_s30] sm:$0xff]  ;;  %721 = vmatpush3.xpose.msk.msra.mxu0 %vm336_vm1, %v334_v1  ;;  %s713_s23 = sshll.u32 %s526_s14, 7  ;;  %s530_s24 = sshll.u32 %s293_s11, 4  ;;  %s531_s24 = int_to_ptr.vmem [resolvable:$true] %s530_s24 }
  0x23   : > { %v333_v3 = vmul.f32 0.35355338, %v332_v2  ;;  %v335_v12 = vld [vmem:[%s320_s8] sm:$0xff]  ;;  %s1032_s5 = scalar_lea.hbm %s1088_s4, %s713_s23  ;;  %s511_s6 = scalar_lea.sflag [#allocation3], %s291_s9 }
  0x24   : > { %726 = vmatpush3.msra.mxu1 %v335_v12  ;;  %s807_s8 = scalar_lea.vmem %s531_s24, 128  ;;  %s905_s0 = smov [#allocation2]  }
  0x25   : > { %723 = vmatmul.mubr.msk.f32.vlgmr.msra.gmra.mrb[0].mxu0 %vm336_vm1, %v333_v3  ;;  %p808_p0 = scmp.ne.s32.totalorder %s531_s24, %s807_s8  ;;  %s811_s10 = sshll.u32 %s905_s0, 4  ;;  %s812_s10 = int_to_ptr.vmem [resolvable:$false] %s811_s10 }
  0x26   : > { %s813_s1 = scalar_lea.vmem %s812_s10, 256  ;;  %p814_p4 = scmp.lt.s32.totalorder %s531_s24, %s812_s10 }
  0x27   : > { %p809_p1 = pnand %p808_p0, %p982_p3  ;;  %p815_p5 = scmp.lt.s32.totalorder %s813_s1, %s807_s8 }
  0x29   : > { %p810_p2 = pneg %p809_p1  ;;  %p816_p6 = por %p815_p5, %p814_p4 }
  0x2b   : > { %p817_p7 = pnand %p816_p6, %p810_p2 }
  0xf8   : > { %v409_v4 = vpop.f32.mrb[0].mxu0 }
  0xf9   : > { %v724_v5 = vpop.f32.mrb[1].mxu0  ;;  %v413_v6 = vsel %vm336_vm1, %v409_v4, -inf }
  0xfa   : > { %414 = vmax.xlane.f32.xlu0 %v413_v6 }
 0x187   : > { %v415_v7 = vpop.xlane.xlu0 %414 }
 0x188   : > { %v416_v8 = vsub.f32 %v409_v4, %v415_v7 }
 0x18a   : > { %v417_v9 = vmul.f32 1.442695, %v416_v8 }
 0x18c   : > { %803 = vpow2.f32 %v417_v9 }
 0x196   : > { %v804_v10 = vpop.eup %803 }
 0x197   : > { %v419_v11 = vsel %vm336_vm1, %v804_v10, 0.0 }
 0x198   : > { %420 = vadd.xlane.f32.xlu0 %v419_v11 }
 0x225   : > { %v421_v13 = vpop.xlane.xlu0 %420 }
 0x226   : > { %805 = vrcp.f32 %v421_v13 }
 0x230   : > { %v806_v14 = vpop.eup %805 }
 0x231   : > { %v423_v15 = vmul.f32 %v806_v14, %v804_v10 }
 0x233   : > { %728 = vmatmul.mubr.msk.f32.vlgmr.msra.gmra.mrb[0].mxu1 %vm336_vm1, %v423_v15  ;;  %424 = vst.msk [vmem:[%s293_s11] sm:$0xff] %vm336_vm1, %v423_v15 }
 0x234   : > { %820 = shalt.err (!%p817_p7)
}
 0x235   : > { %s821_s18 = scalar_lea.hbm %s1032_s5, 128  ;;  %s825_s0 = scalar_lea.hbm %s1088_s4, 1024 }
 0x236   : > { %p822_p9 = scmp.ne.s32.totalorder %s1032_s5, %s821_s18  ;;  %p826_p12 = scmp.lt.u32.totalorder %s1032_s5, %s1088_s4 }
 0x237   : > { %p827_p13 = scmp.lt.u32.totalorder %s825_s0, %s821_s18  ;;  %p829_p1 = scmp.lt.u32.totalorder %s821_s18, %s1032_s5 }
 0x238   : > { %p823_p10 = pnand %p822_p9, %p982_p3 }
 0x239   : > { %p828_p0 = por %p827_p13, %p826_p12 }
 0x23a   : > { %p824_p11 = pneg %p823_p10 }
 0x23b   : > { %p830_p2 = por %p829_p1, %p828_p0 }
 0x23d   : > { %p831_p4 = pnand %p830_p2, %p824_p11 }
 0x23f   : > { %834 = shalt.err (!%p831_p4)
}
 0x240   : > { %730 = dma.vmem_to_hbm [thread:$0]  (%p982_p3), %s531_s24, 128, %s1032_s5, %s511_s6  }
 0x241   : > { %s331_s23 = scalar_lea.vmem %s1087_s3, %s1006_s12 }
 0x306   : > { %v494_v16 = vpop.f32.mrb[0].mxu1 }
 0x307   : > { %498 = vst.msk [vmem:[%s331_s23] sm:$0xff] %vm336_vm1, %v494_v16  ;;  %v729_v17 = vpop.f32.mrb[1].mxu1 }
 0x308 PF: > { %p736_p5 = scmp.ge.s32.totalorder %s901_s22, 2  ;;  %s556_s27 = sand.u32 1, %s873_s15  }
 0x309   : > { %s557_s28 = scalar_lea.sflag [#allocation3], %s556_s27 }
 0x30a   : > { %p733_p6 = pnand %p736_p5, %p991_p8 }
 0x30c   : > { %868 = dma.done.wait (!%p733_p6), %s557_s28, 128  }
 0x30d   : > { %870 = vsyncadd (!%p733_p6), %s557_s28, 4294967168  ;;  %s18_s22 = sadd.s32 1, %s901_s22   ;;  %s1095_s15 = smov %s877_s16 }
 0x30e   : > { %p15_p3 = scmp.ge.s32.totalorder %s18_s22, 10   ;;  %s1096_s16 = smov %s881_s17 }
 0x30f   : > { %s1097_s17 = smov %s1000_s7  ;;  %s1098_s18 = smov %s893_s20 }
 0x310   : > { %s1099_s19 = smov %s897_s21  ;;  %s1100_s20 = smov %s1103_s25 }
 0x311   : > { %s1101_s21 = smov %s1107_s26  ;;  %17 = sbr.rel (!%p15_p3) target bundleno = 8 (0x8), region = 85 }
 0x318   :  { %562 = vsyncpa [#allocation3], 1 }
 0x319   :  { %564 = vsyncpa [#allocation3 + $0x1], 1 }

</bundles_post_ra>
